<compile_context>
chip_gen: v5e
topology: v5e:2x2
jax: 0.10.0
libtpu: 0.0.40
codegen_flags: <defaults>
</compile_context>

<pallas_src>
import functools

import jax
import jax.numpy as jnp
from jax.experimental import pallas as pl
from jax.experimental.pallas import tpu as pltpu


def _round_up(x, m):
    return ((x + m - 1) // m) * m


# ------------------------------ Pallas kernel -------------------------------

def _fused_mlp_kernel(x_ref, w_ref, b_ref, o_ref, *, num_layers):
    """relu(x@W0+b0) -> relu(.@W1+b1) -> ... -> .@W_{L-1}+b_{L-1}, all in VMEM."""
    h = x_ref[...]
    for l in range(num_layers):
        y = jnp.dot(h, w_ref[l], preferred_element_type=jnp.float32)
        y = y + b_ref[l]                      # (1, P) broadcasts over rows
        if l < num_layers - 1:
            y = jnp.maximum(y, 0.0)           # ReLU on hidden layers only
        h = y
    o_ref[...] = h.astype(o_ref.dtype)


def _fused_mlp(x, w_stack, b_stack, *, tm):
    """x: (M_pad, P); w_stack: (L, P, P); b_stack: (L, 1, P). Returns (M_pad, P)."""
    M_pad, P = x.shape
    L = w_stack.shape[0]
    grid = (M_pad // tm,)

    return pl.pallas_call(
        functools.partial(_fused_mlp_kernel, num_layers=L),
        grid=grid,
        in_specs=[
            pl.BlockSpec((tm, P), lambda i: (i, 0)),          # x row tile
            pl.BlockSpec((L, P, P), lambda i: (0, 0, 0)),     # resident weights
            pl.BlockSpec((L, 1, P), lambda i: (0, 0, 0)),     # resident biases
        ],
        out_specs=pl.BlockSpec((tm, P), lambda i: (i, 0)),
        out_shape=jax.ShapeDtypeStruct((M_pad, P), jnp.float32),
        compiler_params=pltpu.CompilerParams(
            dimension_semantics=("parallel",)),
    )(x, w_stack, b_stack)


# ----------------------------- parameter setup -------------------------------

def init_params(key, graphlet_type, pass_dim, out_dim, pass_num):
    """Deterministic init matching nn.Linear / nn.BatchNorm1d defaults.

    Linear weights are stored as (in, out) — transposed vs. PyTorch's
    (out, in) — so the kernel computes x @ W directly.
    """
    C = graphlet_type * pass_dim
    params = []
    for i in range(pass_num):
        in_dims = C
        out_dims = C if i < pass_num - 1 else out_dim
        key, kw, kb = jax.random.split(key, 3)
        bound = 1.0 / (in_dims ** 0.5)  # PyTorch nn.Linear default init range
        w = jax.random.uniform(kw, (in_dims, out_dims), jnp.float32, -bound, bound)
        b = jax.random.uniform(kb, (out_dims,), jnp.float32, -bound, bound)
        if i < pass_num - 1:
            gamma = jnp.ones((out_dims,), jnp.float32)
            beta = jnp.zeros((out_dims,), jnp.float32)
            running_mean = jnp.zeros((out_dims,), jnp.float32)
            running_var = jnp.ones((out_dims,), jnp.float32)
            params.append((w, b, gamma, beta, running_mean, running_var))
        else:
            params.append((w, b, None, None, None, None))
    return params


# ------------------------------- forward pass --------------------------------

def graphlet_message_pass(graphlet_embed, params, eps=1e-5):
    B, S, G, D = graphlet_embed.shape
    C = G * D
    x = graphlet_embed.reshape(B * S, C).astype(jnp.float32)

    # Fold eval-mode BatchNorm into the weights / biases (done once, in JAX).
    ws, bs = [], []
    for (w, b, gamma, beta, mean, var) in params:
        if gamma is not None:
            scale = gamma / jnp.sqrt(var + eps)
            w = w * scale[None, :]
            b = (b - mean) * scale + beta
        ws.append(w.astype(jnp.float32))
        bs.append(b.astype(jnp.float32))

    out_dim = ws[-1].shape[1]
    # Common lane-dense padded feature width for every layer (zero-padded).
    dims = [C] + [w.shape[1] for w in ws]
    P = _round_up(max(dims), 128)

    w_stack = jnp.stack([
        jnp.pad(w, ((0, P - w.shape[0]), (0, P - w.shape[1]))) for w in ws])
    b_stack = jnp.stack([
        jnp.pad(b, (0, P - b.shape[0])).reshape(1, P) for b in bs])

    # Row tiling: cover all rows in one grid step for small M, cap at 512 rows
    # per step for large M; zero-pad rows so no divisibility assert is needed.
    M = B * S
    tm = 512 if M >= 512 else _round_up(M, 8)
    M_pad = _round_up(M, tm)
    x_pad = jnp.pad(x, ((0, M_pad - M), (0, P - C)))

    out = _fused_mlp(x_pad, w_stack, b_stack, tm=tm)
    return out[:M, :out_dim].reshape(B, S, out_dim)


# ------------------------- pure-JAX reference (check) -------------------------

def _reference_forward(graphlet_embed, params, eps=1e-5):
    B, S, G, D = graphlet_embed.shape
    h = graphlet_embed.reshape(B * S, G * D)
    for (w, b, gamma, beta, mean, var) in params:
        h = h @ w + b
        if gamma is not None:
            h = (h - mean) / jnp.sqrt(var + eps) * gamma + beta
            h = jnp.maximum(h, 0.0)
    return h.reshape(B, S, -1)


# ------------------------------------ main ------------------------------------

if __name__ == "__main__":
    key = jax.random.PRNGKey(0)
    B, S = 2, 8
    graphlet_type, pass_dim = 4, 32       # feature dim C = 128 (lane aligned)
    pass_num, out_dim = 3, 32

    k_in, k_p = jax.random.split(key)
    graphlet_embed = jax.random.normal(
        k_in, (B, S, graphlet_type, pass_dim), dtype=jnp.float32
    )
    params = init_params(k_p, graphlet_type, pass_dim, out_dim, pass_num)

    out = graphlet_message_pass(graphlet_embed, params)
    out = jax.block_until_ready(out)
    assert out.shape == (B, S, out_dim) and out.dtype == jnp.float32

    ref = jax.block_until_ready(_reference_forward(graphlet_embed, params))
    assert jnp.allclose(out, ref, atol=1e-4, rtol=1e-4)

    print("KERNEL_OK")
</pallas_src>

<mosaic_0001>
module attributes {stable_mosaic.version = 11 : i64} {
  func.func @_fused_mlp_kernel(%arg0: i32, %arg1: memref<16x128xf32, #tpu.memory_space<vmem>>, %arg2: memref<3x128x128xf32, #tpu.memory_space<vmem>>, %arg3: memref<3x1x128xf32, #tpu.memory_space<vmem>>, %arg4: memref<16x128xf32, #tpu.memory_space<vmem>>) attributes {dimension_semantics = [#tpu.dimension_semantics<parallel>], iteration_bounds = array<i64: 1>, scalar_prefetch = 0 : i64, scratch_operands = 0 : i64, tpu.core_type = #tpu.core_type<tc>, window_params = [{transform_indices = @transform_0, window_bounds = array<i64: 16, 128>}, {pipeline_mode = #tpu.pipeline_mode<synchronous>, transform_indices = @transform_1, window_bounds = array<i64: 3, 128, 128>}, {pipeline_mode = #tpu.pipeline_mode<synchronous>, transform_indices = @transform_2, window_bounds = array<i64: 3, 1, 128>}, {transform_indices = @transform_3, window_bounds = array<i64: 16, 128>}]} {
    %c0 = arith.constant 0 : index
    %c0_0 = arith.constant 0 : index
    %0 = vector.load %arg1[%c0, %c0_0] : memref<16x128xf32, #tpu.memory_space<vmem>>, vector<16x128xf32>
    %c0_1 = arith.constant 0 : index
    %c0_2 = arith.constant 0 : index
    %c0_3 = arith.constant 0 : index
    %1 = vector.load %arg2[%c0_1, %c0_2, %c0_3] : memref<3x128x128xf32, #tpu.memory_space<vmem>>, vector<1x128x128xf32>
    %2 = vector.shape_cast %1 : vector<1x128x128xf32> to vector<128x128xf32>
    %cst = arith.constant dense<0.000000e+00> : vector<16x128xf32>
    %3 = tpu.matmul %0, %2, %cst {dimension_numbers = #tpu.dot_dimension_numbers<[1], [0], [0], [1], [0, 0, 1, 1], [], []>} : vector<16x128xf32>, vector<128x128xf32>, vector<16x128xf32> -> vector<16x128xf32>
    %c0_4 = arith.constant 0 : index
    %c0_5 = arith.constant 0 : index
    %c0_6 = arith.constant 0 : index
    %4 = vector.load %arg3[%c0_4, %c0_5, %c0_6] : memref<3x1x128xf32, #tpu.memory_space<vmem>>, vector<1x1x128xf32>
    %5 = vector.shape_cast %4 : vector<1x1x128xf32> to vector<1x128xf32>
    %6 = vector.broadcast %5 : vector<1x128xf32> to vector<16x128xf32>
    %7 = arith.addf %3, %6 : vector<16x128xf32>
    %cst_7 = arith.constant 0.000000e+00 : f32
    %8 = vector.broadcast %cst_7 : f32 to vector<16x128xf32>
    %9 = arith.maximumf %7, %8 : vector<16x128xf32>
    %c1 = arith.constant 1 : index
    %c0_8 = arith.constant 0 : index
    %c0_9 = arith.constant 0 : index
    %10 = vector.load %arg2[%c1, %c0_8, %c0_9] : memref<3x128x128xf32, #tpu.memory_space<vmem>>, vector<1x128x128xf32>
    %11 = vector.shape_cast %10 : vector<1x128x128xf32> to vector<128x128xf32>
    %cst_10 = arith.constant dense<0.000000e+00> : vector<16x128xf32>
    %12 = tpu.matmul %9, %11, %cst_10 {dimension_numbers = #tpu.dot_dimension_numbers<[1], [0], [0], [1], [0, 0, 1, 1], [], []>} : vector<16x128xf32>, vector<128x128xf32>, vector<16x128xf32> -> vector<16x128xf32>
    %c1_11 = arith.constant 1 : index
    %c0_12 = arith.constant 0 : index
    %c0_13 = arith.constant 0 : index
    %13 = vector.load %arg3[%c1_11, %c0_12, %c0_13] : memref<3x1x128xf32, #tpu.memory_space<vmem>>, vector<1x1x128xf32>
    %14 = vector.shape_cast %13 : vector<1x1x128xf32> to vector<1x128xf32>
    %15 = vector.broadcast %14 : vector<1x128xf32> to vector<16x128xf32>
    %16 = arith.addf %12, %15 : vector<16x128xf32>
    %cst_14 = arith.constant 0.000000e+00 : f32
    %17 = vector.broadcast %cst_14 : f32 to vector<16x128xf32>
    %18 = arith.maximumf %16, %17 : vector<16x128xf32>
    %c2 = arith.constant 2 : index
    %c0_15 = arith.constant 0 : index
    %c0_16 = arith.constant 0 : index
    %19 = vector.load %arg2[%c2, %c0_15, %c0_16] : memref<3x128x128xf32, #tpu.memory_space<vmem>>, vector<1x128x128xf32>
    %20 = vector.shape_cast %19 : vector<1x128x128xf32> to vector<128x128xf32>
    %cst_17 = arith.constant dense<0.000000e+00> : vector<16x128xf32>
    %21 = tpu.matmul %18, %20, %cst_17 {dimension_numbers = #tpu.dot_dimension_numbers<[1], [0], [0], [1], [0, 0, 1, 1], [], []>} : vector<16x128xf32>, vector<128x128xf32>, vector<16x128xf32> -> vector<16x128xf32>
    %c2_18 = arith.constant 2 : index
    %c0_19 = arith.constant 0 : index
    %c0_20 = arith.constant 0 : index
    %22 = vector.load %arg3[%c2_18, %c0_19, %c0_20] : memref<3x1x128xf32, #tpu.memory_space<vmem>>, vector<1x1x128xf32>
    %23 = vector.shape_cast %22 : vector<1x1x128xf32> to vector<1x128xf32>
    %24 = vector.broadcast %23 : vector<1x128xf32> to vector<16x128xf32>
    %25 = arith.addf %21, %24 : vector<16x128xf32>
    %c0_21 = arith.constant 0 : index
    %c0_22 = arith.constant 0 : index
    %26 = vector.load %arg4[%c0_21, %c0_22] : memref<16x128xf32, #tpu.memory_space<vmem>>, vector<16x128xf32>
    tpu.vector_store %arg4[%c0_21, %c0_22], %25 {strides = array<i32>} : memref<16x128xf32, #tpu.memory_space<vmem>>, vector<16x128xf32>,
    return
  }
  func.func @transform_0(%arg0: i32) -> (i32, i32) {
    %c0_i32 = arith.constant 0 : i32
    %c0_i32_0 = arith.constant 0 : i32
    return %arg0, %c0_i32 : i32, i32
  }
  func.func @transform_1(%arg0: i32) -> (i32, i32, i32) {
    %c0_i32 = arith.constant 0 : i32
    %c0_i32_0 = arith.constant 0 : i32
    %c0_i32_1 = arith.constant 0 : i32
    %c0_i32_2 = arith.constant 0 : i32
    return %c0_i32, %c0_i32_0, %c0_i32_1 : i32, i32, i32
  }
  func.func @transform_2(%arg0: i32) -> (i32, i32, i32) {
    %c0_i32 = arith.constant 0 : i32
    %c0_i32_0 = arith.constant 0 : i32
    %c0_i32_1 = arith.constant 0 : i32
    %c0_i32_2 = arith.constant 0 : i32
    return %c0_i32, %c0_i32_0, %c0_i32_1 : i32, i32, i32
  }
  func.func @transform_3(%arg0: i32) -> (i32, i32) {
    %c0_i32 = arith.constant 0 : i32
    %c0_i32_0 = arith.constant 0 : i32
    return %arg0, %c0_i32 : i32, i32
  }
}

</mosaic_0001>

<bundles_post_ra>
// kernel: tpu_custom_call.1
= control target key start
LH: loop header
LB: loop body
LE: loop exit
PB: predicated region body
PF: predicated region fallthrough
CT: control target
= control target key end

     0   :  { %8 = vsyncpa [#allocation3], 0  ;;  %s401_s0 = inlined_call_operand.hbm [shape: f32[16,128], index: 0, kind: input, shape index: {}]   ;;  %s402_s1 = inlined_call_operand.hbm [shape: f32[3,128,128], index: 1, kind: input, shape index: {}]   ;;  %s403_s2 = inlined_call_operand.hbm [shape: f32[3,1,128], index: 2, kind: input, shape index: {}]   ;;  %s404_s3 = inlined_call_operand.hbm [shape: f32[16,128], index: 3, kind: output, shape index: {}]  }
   0x1   :  { %9 = vsyncpa [#allocation6], 0 }
   0x2   :  { %10 = vsyncpa [#allocation4], 0  ;;  %s28_s14 = sshll.u32 %s402_s1, 4  ;;  %s352_s15 = smov [#allocation5]   ;;  %s29_s14 = int_to_ptr.hbm [resolvable:$true] %s28_s14 }
   0x3   :  { %s30_s16 = sshll.u32 %s352_s15, 4  ;;  %s15_s19 = sshll.u32 %s401_s0, 4  ;;  %s31_s16 = int_to_ptr.vmem [resolvable:$true] %s30_s16  ;;  %s16_s19 = int_to_ptr.hbm [resolvable:$true] %s15_s19 }
   0x4   :  { %s353_s20 = smov 128   ;;  %s354_s21 = smov 8  }
   0x5   :  { %36 = dma.hbm_to_vmem [thread:$0]  %s29_s14, 6144, %s31_s16, [#allocation6], %s353_s20, %s353_s20, %s354_s21  }
   0x6   :  { %s355_s22 = smov [#allocation2]   ;;  %s41_s1 = sshll.u32 %s403_s2, 4  ;;  %s42_s1 = int_to_ptr.hbm [resolvable:$true] %s41_s1 }
   0x7   :  { %s17_s23 = sshll.u32 %s355_s22, 4  ;;  %s356_s0 = smov [#allocation7]   ;;  %s18_s23 = int_to_ptr.vmem [resolvable:$true] %s17_s23 }
   0x8   :  { %23 = dma.hbm_to_vmem [thread:$0]  %s16_s19, 256, %s18_s23, [#allocation3], %s353_s20, %s353_s20, %s354_s21  }
   0x9   :  { %s43_s26 = sshll.u32 %s356_s0, 4  ;;  %s357_s27 = smov 16   ;;  %s44_s26 = int_to_ptr.vmem [resolvable:$true] %s43_s26 }
   0xa   :  { %s358_s28 = smov 1  }
   0xb   :  { %49 = dma.hbm_to_vmem [thread:$0]  %s42_s1, 48, %s44_s26, [#allocation6], %s357_s27, %s357_s27, %s358_s28  }
   0xc   :  { %346 = dma.done.wait [#allocation3], 256  }
   0xd   :  { %347 = vsyncadd [#allocation3], 4294967040 }
   0xe   :  { %348 = dma.done.wait [#allocation6], 6192  }
   0xf   :  { %349 = vsyncadd [#allocation6], 4294961104  ;;  %v79_v0 = vld [vmem:[#allocation5 + $0x78] sm:$0xff]  ;;  %v78_v1 = vld [vmem:[#allocation5 + $0x70] sm:$0xff]  ;;  %s359_s2 = smov [#allocation8]   ;;  %s209_s5 = sshll.u32 %s404_s3, 4  ;;  %s210_s5 = int_to_ptr.hbm [resolvable:$true] %s209_s5 }
  0x10   :  { %84 = vmatpush.msra.mxu0 %v79_v0  ;;  %223 = vmatpush.msra.mxu3 %v79_v0  ;;  %v77_v2 = vld [vmem:[#allocation5 + $0x68] sm:$0xff]  ;;  %v76_v3 = vld [vmem:[#allocation5 + $0x60] sm:$0xff]  ;;  %v75_v4 = vld [vmem:[#allocation5 + $0x58] sm:$0xff]  ;;  %s207_s29 = sshll.u32 %s359_s2, 4  ;;  %s208_s29 = int_to_ptr.vmem [resolvable:$true] %s207_s29 }
  0x11   :  { %v125_v5 = vld [vmem:[#allocation5 + $0xf8] sm:$0xff]  ;;  %v124_v6 = vld [vmem:[#allocation5 + $0xf0] sm:$0xff]  ;;  %v123_v8 = vld [vmem:[#allocation5 + $0xe8] sm:$0xff] }
  0x12   :  { %85 = vmatpush.msra.mxu0 %v78_v1  ;;  %224 = vmatpush.msra.mxu3 %v78_v1  ;;  %v74_v7 = vld [vmem:[#allocation5 + $0x50] sm:$0xff]  ;;  %v73_v9 = vld [vmem:[#allocation5 + $0x48] sm:$0xff]  ;;  %v122_v10 = vld [vmem:[#allocation5 + $0xe0] sm:$0xff] }
  0x13   :  { %131 = vmatpush.msra.mxu1 %v125_v5  ;;  %v72_v11 = vld [vmem:[#allocation5 + $0x40] sm:$0xff]  ;;  %v121_v12 = vld [vmem:[#allocation5 + $0xd8] sm:$0xff]  ;;  %v120_v14 = vld [vmem:[#allocation5 + $0xd0] sm:$0xff] }
  0x14   :  { %86 = vmatpush.msra.mxu0 %v77_v2  ;;  %225 = vmatpush.msra.mxu3 %v77_v2  ;;  %v71_v13 = vld [vmem:[#allocation5 + $0x38] sm:$0xff]  ;;  %v70_v15 = vld [vmem:[#allocation5 + $0x30] sm:$0xff]  ;;  %v119_v16 = vld [vmem:[#allocation5 + $0xc8] sm:$0xff] }
  0x15   :  { %132 = vmatpush.msra.mxu1 %v124_v6  ;;  %v69_v17 = vld [vmem:[#allocation5 + $0x28] sm:$0xff]  ;;  %v118_v18 = vld [vmem:[#allocation5 + $0xc0] sm:$0xff]  ;;  %v117_v20 = vld [vmem:[#allocation5 + $0xb8] sm:$0xff] }
  0x16   :  { %87 = vmatpush.msra.mxu0 %v76_v3  ;;  %226 = vmatpush.msra.mxu3 %v76_v3  ;;  %v68_v19 = vld [vmem:[#allocation5 + $0x20] sm:$0xff]  ;;  %v67_v21 = vld [vmem:[#allocation5 + $0x18] sm:$0xff]  ;;  %v116_v22 = vld [vmem:[#allocation5 + $0xb0] sm:$0xff] }
  0x17   :  { %133 = vmatpush.msra.mxu1 %v123_v8  ;;  %v66_v23 = vld [vmem:[#allocation5 + $0x10] sm:$0xff]  ;;  %v115_v24 = vld [vmem:[#allocation5 + $0xa8] sm:$0xff]  ;;  %v114_v26 = vld [vmem:[#allocation5 + $0xa0] sm:$0xff] }
  0x18   :  { %88 = vmatpush.msra.mxu0 %v75_v4  ;;  %227 = vmatpush.msra.mxu3 %v75_v4  ;;  %v65_v25 = vld [vmem:[#allocation5 + $0x8] sm:$0xff]  ;;  %v64_v27 = vld [vmem:[#allocation5] sm:$0xff]  ;;  %v62_v28 = vld [vmem:[#allocation2] sm:$0xff] }
  0x19   :  { %134 = vmatpush.msra.mxu1 %v122_v10  ;;  %v63_v29 = vld [vmem:[#allocation2 + $0x8] sm:$0xff]  ;;  %v112_v31 = vld [vmem:[#allocation5 + $0x90] sm:$0xff]  ;;  %v111_v32 = vld [vmem:[#allocation5 + $0x88] sm:$0xff] }
  0x1a   :  { %89 = vmatpush.msra.mxu0 %v74_v7  ;;  %228 = vmatpush.msra.mxu3 %v74_v7  ;;  %v113_v30 = vld [vmem:[#allocation5 + $0x98] sm:$0xff]  ;;  %v110_v33 = vld [vmem:[#allocation5 + $0x80] sm:$0xff]  ;;  %v171_v35 = vld [vmem:[#allocation5 + $0x170] sm:$0xff] }
  0x1b   :  { %135 = vmatpush.msra.mxu1 %v121_v12  ;;  %v172_v34 = vld [vmem:[#allocation5 + $0x178] sm:$0xff]  ;;  %v170_v36 = vld [vmem:[#allocation5 + $0x168] sm:$0xff]  ;;  %v169_v37 = vld [vmem:[#allocation5 + $0x160] sm:$0xff] }
  0x1c   :  { %90 = vmatpush.msra.mxu0 %v73_v9  ;;  %229 = vmatpush.msra.mxu3 %v73_v9  ;;  %v168_v38 = vld [vmem:[#allocation5 + $0x158] sm:$0xff]  ;;  %v167_v39 = vld [vmem:[#allocation5 + $0x150] sm:$0xff]  ;;  %v166_v40 = vld [vmem:[#allocation5 + $0x148] sm:$0xff] }
  0x1d   :  { %136 = vmatpush.msra.mxu1 %v120_v14  ;;  %178 = vmatpush.msra.mxu2 %v172_v34  ;;  %v165_v41 = vld [vmem:[#allocation5 + $0x140] sm:$0xff]  ;;  %v164_v42 = vld [vmem:[#allocation5 + $0x138] sm:$0xff]  ;;  %v163_v44 = vld [vmem:[#allocation5 + $0x130] sm:$0xff] }
  0x1e   :  { %91 = vmatpush.msra.mxu0 %v72_v11  ;;  %230 = vmatpush.msra.mxu3 %v72_v11  ;;  %v247_v43 = vld [vmem:[#allocation7] ss:$0 sm:$0xff]  ;;  %v162_v45 = vld [vmem:[#allocation5 + $0x128] sm:$0xff]  ;;  %v160_v50 = vld [vmem:[#allocation5 + $0x118] sm:$0xff] }
  0x1f   :  { %137 = vmatpush.msra.mxu1 %v119_v16  ;;  %179 = vmatpush.msra.mxu2 %v171_v35  ;;  %v161_v48 = vld [vmem:[#allocation5 + $0x120] sm:$0xff]  ;;  %v159_v54 = vld [vmem:[#allocation5 + $0x110] sm:$0xff]  ;;  %v158_v55 = vld [vmem:[#allocation5 + $0x108] sm:$0xff] }
  0x20   :  { %92 = vmatpush.msra.mxu0 %v71_v13  ;;  %231 = vmatpush.msra.mxu3 %v71_v13  ;;  %v157_v56 = vld [vmem:[#allocation5 + $0x100] sm:$0xff] }
  0x21   :  { %138 = vmatpush.msra.mxu1 %v118_v18  ;;  %180 = vmatpush.msra.mxu2 %v170_v36  ;;  %v248_v57 = vld [vmem:[#allocation7 + $0x1] ss:$0 sm:$0xff]  ;;  %v249_v0 = vld [vmem:[#allocation7 + $0x2] ss:$0 sm:$0xff] }
  0x22   :  { %93 = vmatpush.msra.mxu0 %v70_v15  ;;  %232 = vmatpush.msra.mxu3 %v70_v15 }
  0x23   :  { %139 = vmatpush.msra.mxu1 %v117_v20  ;;  %181 = vmatpush.msra.mxu2 %v169_v37 }
  0x24   :  { %94 = vmatpush.msra.mxu0 %v69_v17  ;;  %233 = vmatpush.msra.mxu3 %v69_v17 }
  0x25   :  { %140 = vmatpush.msra.mxu1 %v116_v22  ;;  %182 = vmatpush.msra.mxu2 %v168_v38 }
  0x26   :  { %95 = vmatpush.msra.mxu0 %v68_v19  ;;  %234 = vmatpush.msra.mxu3 %v68_v19 }
  0x27   :  { %141 = vmatpush.msra.mxu1 %v115_v24  ;;  %183 = vmatpush.msra.mxu2 %v167_v39 }
  0x28   :  { %96 = vmatpush.msra.mxu0 %v67_v21  ;;  %235 = vmatpush.msra.mxu3 %v67_v21 }
  0x29   :  { %142 = vmatpush.msra.mxu1 %v114_v26  ;;  %184 = vmatpush.msra.mxu2 %v166_v40 }
  0x2a   :  { %97 = vmatpush.msra.mxu0 %v66_v23  ;;  %236 = vmatpush.msra.mxu3 %v66_v23 }
  0x2b   :  { %143 = vmatpush.msra.mxu1 %v113_v30  ;;  %185 = vmatpush.msra.mxu2 %v165_v41 }
  0x2c   :  { %98 = vmatpush.msra.mxu0 %v65_v25  ;;  %237 = vmatpush.msra.mxu3 %v65_v25 }
  0x2d   :  { %144 = vmatpush.msra.mxu1 %v112_v31  ;;  %186 = vmatpush.msra.mxu2 %v164_v42 }
  0x2e   :  { %99 = vmatpush.msra.mxu0 %v64_v27  ;;  %238 = vmatpush.msra.mxu3 %v64_v27 }
  0x2f   :  { %100 = vmatmul.f32.vlgmr.msra.gmra.mxu0 %v62_v28  ;;  %103 = vmatmul.f32.vlgmr.msra.gmra.mxu3 %v63_v29 }
  0x30   :  { %145 = vmatpush.msra.mxu1 %v111_v32  ;;  %187 = vmatpush.msra.mxu2 %v163_v44 }
  0x32   :  { %146 = vmatpush.msra.mxu1 %v110_v33  ;;  %188 = vmatpush.msra.mxu2 %v162_v45 }
  0x34   :  { %189 = vmatpush.msra.mxu2 %v161_v48 }
  0x36   :  { %190 = vmatpush.msra.mxu2 %v160_v50 }
  0x38   :  { %191 = vmatpush.msra.mxu2 %v159_v54 }
  0x3a   :  { %192 = vmatpush.msra.mxu2 %v158_v55 }
  0x3c   :  { %193 = vmatpush.msra.mxu2 %v157_v56 }
  0xac   :  { %v101_v46 = vpop.f32.mrf.mxu0 }
  0xad   :  { %v102_v47 = vadd.f32 %v247_v43, %v101_v46 }
  0xaf   :  { %v107_v49 = vmax.f32 %v102_v47, 0.0 }
  0xb1   :  { %147 = vmatmul.f32.vlgmr.msra.gmra.mxu1 %v107_v49 }
  0xb2   :  { %v104_v51 = vpop.f32.mrf.mxu3 }
  0xb3   :  { %v105_v52 = vadd.f32 %v247_v43, %v104_v51 }
  0xb5   :  { %v108_v53 = vmax.f32 %v105_v52, 0.0 }
  0xb9   :  { %150 = vmatmul.f32.gmra.mxu1 %v108_v53 }
 0x12e   :  { %v148_v58 = vpop.f32.mrf.mxu1 }
 0x12f   :  { %v149_v59 = vadd.f32 %v248_v57, %v148_v58 }
 0x131   :  { %v154_v60 = vmax.f32 %v149_v59, 0.0 }
 0x133   :  { %194 = vmatmul.f32.vlgmr.msra.gmra.mxu2 %v154_v60 }
 0x136   :  { %v151_v61 = vpop.f32.mrf.mxu1 }
 0x137   :  { %v152_v62 = vadd.f32 %v248_v57, %v151_v61 }
 0x139   :  { %v155_v63 = vmax.f32 %v152_v62, 0.0 }
 0x13b   :  { %197 = vmatmul.f32.gmra.mxu2 %v155_v63 }
 0x1b6   :  { %v195_v1 = vpop.f32.mrf.mxu2 }
 0x1b7   :  { %v196_v2 = vadd.f32 %v249_v0, %v195_v1 }
 0x1b9   :  { %201 = vst [vmem:[#allocation8] sm:$0xff] %v196_v2 }
 0x1be   :  { %v198_v3 = vpop.f32.mrf.mxu2 }
 0x1bf   :  { %v199_v4 = vadd.f32 %v249_v0, %v198_v3 }
 0x1c1   :  { %202 = vst [vmem:[#allocation8 + $0x8] sm:$0xff] %v199_v4 }
 0x1c2   :  { %215 = dma.vmem_to_hbm [thread:$0]  %s208_s29, 256, %s210_s5, [#allocation4], %s353_s20, %s353_s20, %s354_s21  }
 0x1c3   :  { %350 = dma.done.wait [#allocation4], 256  }
 0x1c4   :  { %351 = vsyncadd [#allocation4], 4294967040 }
 0x1c5   :  { %220 = vsyncpa [#allocation3], 1 }
 0x1c6   :  { %221 = vsyncpa [#allocation6], 1 }
 0x1c7   :  { %222 = vsyncpa [#allocation4], 1 }

</bundles_post_ra>
